<compile_context>
chip_gen: v6e
topology: v6e:2x2x1
jax: 0.10.0
libtpu: 0.0.40
codegen_flags: <defaults>
</compile_context>

<pallas_src>
import functools
import math

import jax
import jax.numpy as jnp
from jax.experimental import pallas as pl
from jax.experimental.pallas import tpu as pltpu


def _round_up(n, m):
    return (n + m - 1) // m * m


def _choose_tiling(batch, cap):
    """Pick (tile_b, n_steps, padded_batch).

    Pads the batch only to 16-row granularity (bf16 sublane packing) and splits
    it into an even number of equal tiles (>=2 once the batch is moderate) so
    both v7x TensorCores stay busy; tiles are capped at `cap` rows so per-step
    work dwarfs the ~0.35 us fixed pipeline overhead.
    """
    gran = 16  # bf16 sublane packing granularity (also satisfies the 8-row rule)
    padded = _round_up(batch, gran)
    if padded > cap:
        n_steps = -(-padded // cap)
        if n_steps % 2:  # even step count -> balanced megacore sharding on v7x
            n_steps += 1
    elif padded >= 1024:
        n_steps = 2      # give the second v7x TensorCore work once it's worth it
    else:
        n_steps = 1
    tile_b = _round_up(-(-padded // n_steps), gran)
    padded = tile_b * n_steps
    return tile_b, n_steps, padded


def _make_mlp_kernel(n_hidden):
    """Fused kernel: n_hidden (Linear+BN+ReLU) blocks + output Linear (lane reduce)."""

    def kernel(x_ref, *refs):
        out_ref = refs[-1]
        h = x_ref[...]                                    # (TILE_B, Din) bf16
        idx = 0
        for _ in range(n_hidden):
            w_ref, c_ref = refs[idx], refs[idx + 1]
            idx += 2
            # MXU matmul in bf16 with f32 accumulation.  For the first layer h
            # is already bf16 (cast host-side), so astype is a no-op; later
            # layers cast their f32 ReLU output back down.
            h = jnp.dot(h.astype(jnp.bfloat16), w_ref[...],
                        preferred_element_type=jnp.float32)
            # Folded Linear-bias + BatchNorm(eval) affine, then ReLU.
            # Dropout is identity in eval mode.
            h = jnp.maximum(h + c_ref[...], 0.0)
        w_out_ref, b_out_ref = refs[idx], refs[idx + 1]
        # Output Linear(., 1): VPU mul + XLU lane reduction (no N=1 MXU matmul).
        # Emit the result lane-dense (1, TILE_B) so the store is unmasked.
        v = jnp.sum(h * w_out_ref[...], axis=-1)              # (TILE_B,) f32
        row = v[None, :] + b_out_ref[...]                      # (1, TILE_B)
        out_ref[...] = row[None, :, :].astype(out_ref.dtype)   # (1, 1, TILE_B)

    return kernel


def init_mlp_params(key, input_dim, embed_dims, output_layer=True):
    """Deterministic parameter init mirroring the PyTorch module's shapes."""
    params = []
    dim = input_dim
    for embed_dim in embed_dims:
        key, k_w, k_b, k_g, k_be, k_m, k_v = jax.random.split(key, 7)
        bound = 1.0 / math.sqrt(dim)
        w = jax.random.uniform(k_w, (dim, embed_dim), jnp.float32, -bound, bound)
        b = jax.random.uniform(k_b, (embed_dim,), jnp.float32, -bound, bound)
        gamma = 1.0 + 0.1 * jax.random.normal(k_g, (embed_dim,), jnp.float32)
        beta = 0.1 * jax.random.normal(k_be, (embed_dim,), jnp.float32)
        run_mean = 0.1 * jax.random.normal(k_m, (embed_dim,), jnp.float32)
        run_var = 1.0 + 0.1 * jax.random.uniform(k_v, (embed_dim,), jnp.float32)
        params.append(dict(w=w, b=b, gamma=gamma, beta=beta,
                           running_mean=run_mean, running_var=run_var))
        dim = embed_dim
    out_params = None
    if output_layer:
        key, k_w, k_b = jax.random.split(key, 3)
        bound = 1.0 / math.sqrt(dim)
        w_out = jax.random.uniform(k_w, (dim, 1), jnp.float32, -bound, bound)
        b_out = jax.random.uniform(k_b, (1,), jnp.float32, -bound, bound)
        out_params = dict(w=w_out, b=b_out)
    return params, out_params


@functools.partial(jax.jit, static_argnames=("eps",))
def mlp_forward(x, layer_params, out_params, eps=1e-5):
    """Runs the fused Pallas MLP kernel. x: (batch, input_dim) -> (batch, 1) f32."""
    batch, in_dim = x.shape
    n_hidden = len(layer_params)

    # --- batch tiling: sized by per-step overhead, bounded by activation VMEM --
    widest = max([in_dim] + [_round_up(int(p["w"].shape[1]), 128)
                             for p in layer_params])
    # keep a single f32 activation tile to ~8 MiB so tile + double buffers +
    # resident weights stay well inside every generation's scoped VMEM limit.
    cap = min(4096, max(512, (8 * 1024 * 1024) // (widest * 4) // 512 * 512))
    tile_b, n_steps, padded_batch = _choose_tiling(batch, cap)

    # x is the only HBM-streamed operand; stream it as bf16 (numerically the same
    # as the in-kernel truncation it replaces).  No-op if the caller passes bf16.
    x = x.astype(jnp.bfloat16)
    if padded_batch != batch:
        x = jnp.pad(x, ((0, padded_batch - batch), (0, 0)))

    kernel_args = [x]
    # NOTE: if an xprof trace shows exposed x DMA at large tiles, add
    # pipeline_mode=pl.Buffered(3) to this spec only.
    in_specs = [pl.BlockSpec((tile_b, in_dim), lambda i: (i, 0))]
    flops = 0
    prev_dim = in_dim
    for p in layer_params:
        din, dout = p["w"].shape
        inv_std = 1.0 / jnp.sqrt(p["running_var"] + eps)
        scale = p["gamma"] * inv_std
        shift = p["beta"] - p["running_mean"] * scale
        w = p["w"] * scale[None, :]            # fold BN scale into columns
        c = p["b"] * scale + shift             # folded bias + BN shift
        dout_pad = _round_up(dout, 128)
        w = jnp.pad(w, ((0, prev_dim - din), (0, dout_pad - dout)))
        c = jnp.pad(c, (0, dout_pad - dout)).reshape(1, dout_pad)
        # bf16 weights after BN folding: relative error unchanged; keep f32 if
        # running_var is pathologically small and accuracy matters.
        kernel_args += [w.astype(jnp.bfloat16), c]
        in_specs += [pl.BlockSpec(w.shape, lambda i: (0, 0)),
                     pl.BlockSpec(c.shape, lambda i: (0, 0))]
        flops += 2 * padded_batch * prev_dim * dout_pad
        prev_dim = dout_pad

    last_dim = out_params["w"].shape[0]
    w_out = jnp.pad(out_params["w"].T, ((0, 0), (0, prev_dim - last_dim)))  # (1, D)
    b_out = out_params["b"].reshape(1, 1)
    kernel_args += [w_out, b_out]
    in_specs += [pl.BlockSpec(w_out.shape, lambda i: (0, 0)),
                 pl.BlockSpec((1, 1), lambda i: (0, 0))]
    flops += 2 * padded_batch * prev_dim

    bytes_accessed = sum(int(a.size) * a.dtype.itemsize for a in kernel_args)
    bytes_accessed += padded_batch * 4   # output

    out = pl.pallas_call(
        _make_mlp_kernel(n_hidden),
        out_shape=jax.ShapeDtypeStruct((n_steps, 1, tile_b), jnp.float32),
        grid=(n_steps,),
        in_specs=in_specs,
        out_specs=pl.BlockSpec((1, 1, tile_b), lambda i: (i, 0, 0)),
        compiler_params=pltpu.CompilerParams(
            dimension_semantics=("parallel",),          # megacore sharding on v7x
            vmem_limit_bytes=32 * 1024 * 1024),         # generous; usage is a few MiB
        cost_estimate=pl.CostEstimate(flops=flops, transcendentals=0,
                                      bytes_accessed=bytes_accessed),
    )(*kernel_args)
    # Lane-dense (n_steps, 1, tile_b) rows -> (batch, 1); padded tail rows compute
    # garbage and must be sliced off here.
    return out.reshape(padded_batch, 1)[:batch]


def mlp_reference(x, layer_params, out_params, eps=1e-5):
    """Plain-JAX f32 reference (eval-mode PyTorch semantics, unfolded params)."""
    h = x
    for p in layer_params:
        h = h @ p["w"] + p["b"]
        h = (h - p["running_mean"]) / jnp.sqrt(p["running_var"] + eps)
        h = h * p["gamma"] + p["beta"]
        h = jnp.maximum(h, 0.0)
    return h @ out_params["w"] + out_params["b"]


if __name__ == "__main__":
    key = jax.random.PRNGKey(0)
    k_x, k_x2, k_p = jax.random.split(key, 3)

    input_dim = 32
    embed_dims = (64, 32)
    dropout = 0.2  # identity in eval mode

    layer_params, out_params = init_mlp_params(k_p, input_dim, embed_dims,
                                               output_layer=True)

    # Small shape (single grid step, 16-row padded tile).
    x = jax.random.normal(k_x, (8, input_dim), jnp.float32)
    out = jax.block_until_ready(mlp_forward(x, layer_params, out_params))
    ref = mlp_reference(x, layer_params, out_params)
    assert out.shape == (8, 1)
    err = jnp.max(jnp.abs(out - ref))
    assert jnp.allclose(out, ref, atol=5e-2, rtol=5e-2), f"mismatch: max abs err {err}"

    # Larger, non-divisible batch: 2-step grid (v7x-balanced), ~27 rows of tail pad
    # instead of the previous full-tile padding.
    x2 = jax.random.normal(k_x2, (1029, input_dim), jnp.float32)
    out2 = jax.block_until_ready(mlp_forward(x2, layer_params, out_params))
    ref2 = mlp_reference(x2, layer_params, out_params)
    assert out2.shape == (1029, 1)
    err2 = jnp.max(jnp.abs(out2 - ref2))
    assert jnp.allclose(out2, ref2, atol=5e-2, rtol=5e-2), f"mismatch: max abs err {err2}"

    print("KERNEL_OK")
</pallas_src>

<mosaic_0001>
module attributes {stable_mosaic.version = 11 : i64} {
  func.func @kernel(%arg0: i32, %arg1: memref<16x32xbf16, #tpu.memory_space<vmem>>, %arg2: memref<32x128xbf16, #tpu.memory_space<vmem>>, %arg3: memref<1x128xf32, #tpu.memory_space<vmem>>, %arg4: memref<128x128xbf16, #tpu.memory_space<vmem>>, %arg5: memref<1x128xf32, #tpu.memory_space<vmem>>, %arg6: memref<1x128xf32, #tpu.memory_space<vmem>>, %arg7: memref<1x1xf32, #tpu.memory_space<vmem>>, %arg8: memref<1x1x16xf32, #tpu.memory_space<vmem>>) attributes {dimension_semantics = [#tpu.dimension_semantics<parallel>], iteration_bounds = array<i64: 1>, scalar_prefetch = 0 : i64, scratch_operands = 0 : i64, tpu.core_type = #tpu.core_type<tc>, window_params = [{transform_indices = @transform_0, window_bounds = array<i64: 16, 32>}, {pipeline_mode = #tpu.pipeline_mode<synchronous>, transform_indices = @transform_1, window_bounds = array<i64: 32, 128>}, {pipeline_mode = #tpu.pipeline_mode<synchronous>, transform_indices = @transform_2, window_bounds = array<i64: 1, 128>}, {pipeline_mode = #tpu.pipeline_mode<synchronous>, transform_indices = @transform_3, window_bounds = array<i64: 128, 128>}, {pipeline_mode = #tpu.pipeline_mode<synchronous>, transform_indices = @transform_4, window_bounds = array<i64: 1, 128>}, {pipeline_mode = #tpu.pipeline_mode<synchronous>, transform_indices = @transform_5, window_bounds = array<i64: 1, 128>}, {pipeline_mode = #tpu.pipeline_mode<synchronous>, transform_indices = @transform_6, window_bounds = array<i64: 1, 1>}, {transform_indices = @transform_7, window_bounds = array<i64: 1, 1, 16>}]} {
    %c0 = arith.constant 0 : index
    %c0_0 = arith.constant 0 : index
    %0 = vector.load %arg1[%c0, %c0_0] : memref<16x32xbf16, #tpu.memory_space<vmem>>, vector<16x32xbf16>
    %c0_1 = arith.constant 0 : index
    %c0_2 = arith.constant 0 : index
    %1 = vector.load %arg2[%c0_1, %c0_2] : memref<32x128xbf16, #tpu.memory_space<vmem>>, vector<32x128xbf16>
    %cst = arith.constant dense<0.000000e+00> : vector<16x128xf32>
    %2 = tpu.matmul %0, %1, %cst {dimension_numbers = #tpu.dot_dimension_numbers<[1], [0], [0], [1], [0, 0, 1, 1], [], []>} : vector<16x32xbf16>, vector<32x128xbf16>, vector<16x128xf32> -> vector<16x128xf32>
    %c0_3 = arith.constant 0 : index
    %c0_4 = arith.constant 0 : index
    %3 = vector.load %arg3[%c0_3, %c0_4] : memref<1x128xf32, #tpu.memory_space<vmem>>, vector<1x128xf32>
    %4 = vector.broadcast %3 : vector<1x128xf32> to vector<16x128xf32>
    %5 = arith.addf %2, %4 : vector<16x128xf32>
    %cst_5 = arith.constant 0.000000e+00 : f32
    %6 = vector.broadcast %cst_5 : f32 to vector<16x128xf32>
    %7 = arith.maximumf %5, %6 : vector<16x128xf32>
    %8 = arith.truncf %7 : vector<16x128xf32> to vector<16x128xbf16>
    %c0_6 = arith.constant 0 : index
    %c0_7 = arith.constant 0 : index
    %9 = vector.load %arg4[%c0_6, %c0_7] : memref<128x128xbf16, #tpu.memory_space<vmem>>, vector<128x128xbf16>
    %cst_8 = arith.constant dense<0.000000e+00> : vector<16x128xf32>
    %10 = tpu.matmul %8, %9, %cst_8 {dimension_numbers = #tpu.dot_dimension_numbers<[1], [0], [0], [1], [0, 0, 1, 1], [], []>} : vector<16x128xbf16>, vector<128x128xbf16>, vector<16x128xf32> -> vector<16x128xf32>
    %c0_9 = arith.constant 0 : index
    %c0_10 = arith.constant 0 : index
    %11 = vector.load %arg5[%c0_9, %c0_10] : memref<1x128xf32, #tpu.memory_space<vmem>>, vector<1x128xf32>
    %12 = vector.broadcast %11 : vector<1x128xf32> to vector<16x128xf32>
    %13 = arith.addf %10, %12 : vector<16x128xf32>
    %cst_11 = arith.constant 0.000000e+00 : f32
    %14 = vector.broadcast %cst_11 : f32 to vector<16x128xf32>
    %15 = arith.maximumf %13, %14 : vector<16x128xf32>
    %c0_12 = arith.constant 0 : index
    %c0_13 = arith.constant 0 : index
    %16 = vector.load %arg6[%c0_12, %c0_13] : memref<1x128xf32, #tpu.memory_space<vmem>>, vector<1x128xf32>
    %17 = vector.broadcast %16 : vector<1x128xf32> to vector<16x128xf32>
    %18 = arith.mulf %15, %17 : vector<16x128xf32>
    %cst_14 = arith.constant dense<0.000000e+00> : vector<16xf32>
    %19 = vector.multi_reduction <add>, %18, %cst_14 [1] : vector<16x128xf32> to vector<16xf32>
    %20 = vector.shape_cast %19 : vector<16xf32> to vector<1x16xf32>
    %c0_15 = arith.constant 0 : index
    %c0_16 = arith.constant 0 : index
    %21 = vector.load %arg7[%c0_15, %c0_16] : memref<1x1xf32, #tpu.memory_space<vmem>>, vector<1x1xf32>
    %22 = vector.broadcast %21 : vector<1x1xf32> to vector<1x16xf32>
    %23 = arith.addf %20, %22 : vector<1x16xf32>
    %24 = vector.shape_cast %23 : vector<1x16xf32> to vector<1x1x16xf32>
    %c0_17 = arith.constant 0 : index
    %c0_18 = arith.constant 0 : index
    %c0_19 = arith.constant 0 : index
    %25 = vector.load %arg8[%c0_17, %c0_18, %c0_19] : memref<1x1x16xf32, #tpu.memory_space<vmem>>, vector<1x1x16xf32>
    tpu.vector_store %arg8[%c0_17, %c0_18, %c0_19], %24 {strides = array<i32>} : memref<1x1x16xf32, #tpu.memory_space<vmem>>, vector<1x1x16xf32>,
    return
  }
  func.func @transform_0(%arg0: i32) -> (i32, i32) {
    %c0_i32 = arith.constant 0 : i32
    %c0_i32_0 = arith.constant 0 : i32
    return %arg0, %c0_i32 : i32, i32
  }
  func.func @transform_1(%arg0: i32) -> (i32, i32) {
    %c0_i32 = arith.constant 0 : i32
    %c0_i32_0 = arith.constant 0 : i32
    %c0_i32_1 = arith.constant 0 : i32
    return %c0_i32, %c0_i32_0 : i32, i32
  }
  func.func @transform_2(%arg0: i32) -> (i32, i32) {
    %c0_i32 = arith.constant 0 : i32
    %c0_i32_0 = arith.constant 0 : i32
    %c0_i32_1 = arith.constant 0 : i32
    return %c0_i32, %c0_i32_0 : i32, i32
  }
  func.func @transform_3(%arg0: i32) -> (i32, i32) {
    %c0_i32 = arith.constant 0 : i32
    %c0_i32_0 = arith.constant 0 : i32
    %c0_i32_1 = arith.constant 0 : i32
    return %c0_i32, %c0_i32_0 : i32, i32
  }
  func.func @transform_4(%arg0: i32) -> (i32, i32) {
    %c0_i32 = arith.constant 0 : i32
    %c0_i32_0 = arith.constant 0 : i32
    %c0_i32_1 = arith.constant 0 : i32
    return %c0_i32, %c0_i32_0 : i32, i32
  }
  func.func @transform_5(%arg0: i32) -> (i32, i32) {
    %c0_i32 = arith.constant 0 : i32
    %c0_i32_0 = arith.constant 0 : i32
    %c0_i32_1 = arith.constant 0 : i32
    return %c0_i32, %c0_i32_0 : i32, i32
  }
  func.func @transform_6(%arg0: i32) -> (i32, i32) {
    %c0_i32 = arith.constant 0 : i32
    %c0_i32_0 = arith.constant 0 : i32
    %c0_i32_1 = arith.constant 0 : i32
    return %c0_i32, %c0_i32_0 : i32, i32
  }
  func.func @transform_7(%arg0: i32) -> (i32, i32, i32) {
    %c0_i32 = arith.constant 0 : i32
    %c0_i32_0 = arith.constant 0 : i32
    %c0_i32_1 = arith.constant 0 : i32
    return %arg0, %c0_i32, %c0_i32_0 : i32, i32, i32
  }
}

</mosaic_0001>

<bundles_post_ra>
// kernel: mlp_forward.1
= control target key start
LH: loop header
LB: loop body
LE: loop exit
PB: predicated region body
PF: predicated region fallthrough
CT: control target
= control target key end

     0   :  { %v339_v0 = vmov 0.0   ;;  %vm340_vm0 = vmmov 0   ;;  %vm59_vm1 = vcmask 261120   ;;  %v341_v23 = vmov 0   ;;  %s430_s1 = inlined_call_operand.vmem [shape: bf16[32,128], index: 1, kind: input, shape index: {}]   ;;  %s431_s3 = inlined_call_operand.vmem [shape: bf16[128,128], index: 3, kind: input, shape index: {}]   ;;  %s432_s0 = inlined_call_operand.vmem [shape: bf16[16,32], index: 0, kind: input, shape index: {}]   ;;  %s433_s2 = inlined_call_operand.vmem [shape: f32[1,128], index: 2, kind: input, shape index: {}]   ;;  %s434_s6 = inlined_call_operand.<no memory space> [shape: f32[1,1], index: 6, kind: input, shape index: {}]   ;;  %s435_s4 = inlined_call_operand.vmem [shape: f32[1,128], index: 4, kind: input, shape index: {}]   ;;  %s436_s5 = inlined_call_operand.vmem [shape: f32[1,128], index: 5, kind: input, shape index: {}]   ;;  %s437_s7 = inlined_call_operand.vmem [shape: f32[1,1,16], index: 7, kind: output, shape index: {}]  }
   0x1   :  { %295 = vmatprep.subr.bf16.mxu0 %v339_v0  ;;  %v328_v1 = vld [vmem:[%s430_s1 + $0x8] sm:$0xff]   ;;  %299 = vmatprep.mubr.msk.bf16.mxu0 %vm340_vm0, %v339_v0  ;;  %v329_v2 = vld [vmem:[%s430_s1] sm:$0xff]   ;;  %v331_v3 = vld [vmem:[%s431_s3 + $0x38] sm:$0xff]   ;;  %v12_v22 = vstv %s434_s6  ;;  %v240_v37 = vlaneseq  ;;  %vm259_vm2 = vcmask 130112   ;;  %vm262_vm3 = vcmask 122880  }
   0x2   :  { %303 = vmatprep.subr.bf16.mxu1 %v339_v0  ;;  %319 = vmatprep.mubr.msk.bf16.mxu1 %vm340_vm0, %v339_v0  ;;  %v330_v4 = vld [vmem:[%s432_s0] sm:$0xff]   ;;  %v332_v5 = vld [vmem:[%s431_s3 + $0x30] sm:$0xff]   ;;  %v333_v6 = vld [vmem:[%s431_s3 + $0x28] sm:$0xff]   ;;  %13 = vst [vmem:[#allocation2] sm:$0x1] %v12_v22 }
   0x3   :  { %296 = vmatpush3.bf16.msra.mxu0 %v328_v1  ;;  %304 = vmatpush3.bf16.msra.mxu1 %v331_v3  ;;  %v334_v7 = vld [vmem:[%s431_s3 + $0x20] sm:$0xff]   ;;  %v335_v8 = vld [vmem:[%s431_s3 + $0x18] sm:$0xff]   ;;  %v336_v9 = vld [vmem:[%s431_s3 + $0x10] sm:$0xff]   ;;  %v241_v38 = vshrl.u32 %v240_v37, 7  ;;  %v249_v41 = vand.u32 127, %v240_v37 }
   0x4   :  { %297 = vmatprep.subr.bf16.mxu0 %v339_v0  ;;  %305 = vmatprep.subr.bf16.mxu1 %v339_v0  ;;  %v337_v10 = vld [vmem:[%s431_s3 + $0x8] sm:$0xff]   ;;  %v338_v11 = vld [vmem:[%s431_s3] sm:$0xff]  }
   0x5   :  { %v268_v12 = vld [vmem:[%s433_s2] ss:$0 sm:$0xff]  ;;  %326 = vset.pattern.permute.xlu1 %v341_v23  ;;  %327 = vset.pattern.permute.xlu0 %v341_v23  ;;  %v242_v39 = vsub.s32 0, %v241_v38  ;;  %v254_v43 = vadd.s32 4294967288, %v249_v41  ;;  %v252_v45 = vsub.s32 %v249_v41, %v241_v38 }
   0x6   :  { %v273_v25 = vld [vmem:[%s435_s4] ss:$0 sm:$0xff] }
   0x7   :  { %298 = vmatpush3.bf16.msra.mxu0 %v329_v2  ;;  %306 = vmatpush3.bf16.msra.mxu1 %v332_v5  ;;  %v282_v29 = vld [vmem:[%s436_s5] ss:$0 sm:$0xff]  ;;  %v257_v47 = vsub.s32 %v254_v43, %v241_v38 }
   0x8   :  { %307 = vmatprep.subr.bf16.mxu1 %v339_v0 }
   0x9   :  { %v234_v24 = vld [vmem:[#allocation2] sm:$0x1] }
   0xa   :  { %300 = vmatmul.mubr.msk.bf16.vlgmr.msra.gmra.mxu0 %vm59_vm1, %v330_v4  ;;  %237 = vperm.xlu1 %326, %v234_v24  }
   0xb   :  { %308 = vmatpush3.bf16.msra.mxu1 %v333_v6 }
   0xc   :  { %309 = vmatprep.subr.bf16.mxu1 %v339_v0 }
   0xf   :  { %310 = vmatpush3.bf16.msra.mxu1 %v334_v7 }
  0x10   :  { %311 = vmatprep.subr.bf16.mxu1 %v339_v0 }
  0x13   :  { %312 = vmatpush3.bf16.msra.mxu1 %v335_v8 }
  0x14   :  { %313 = vmatprep.subr.bf16.mxu1 %v339_v0 }
  0x17   :  { %314 = vmatpush3.bf16.msra.mxu1 %v336_v9 }
  0x18   :  { %315 = vmatprep.subr.bf16.mxu1 %v339_v0 }
  0x1b   :  { %316 = vmatpush3.bf16.msra.mxu1 %v337_v10 }
  0x1c   :  { %317 = vmatprep.subr.bf16.mxu1 %v339_v0 }
  0x1f   :  { %318 = vmatpush3.bf16.msra.mxu1 %v338_v11 }
  0x85   :  { %v238_v40 = vpop.permute.xlu1 %237 }
  0x86   :  { %v243_v42 = vrot.slane %v238_v40, %v242_v39 }
  0xca   :  { %v97_v13 = vpop.f32.mrf.mxu0 }
  0xcb   :  { %v98_v15 = vadd.f32 %v268_v12, %v97_v13 }
  0xcc   :  { %v301_v14 = vpop.f32.mrf.mxu0 }
  0xcd   :  { %v104_v19 = vmax.f32 %v98_v15, 0.0 }
  0xce   :  { %v100_v16 = vpop.f32.mrf.mxu0 }
  0xcf   :  { %v101_v17 = vadd.f32 %v268_v12, %v100_v16 }
  0xd0   :  { %v302_v18 = vpop.f32.mrf.mxu0 }
  0xd1   :  { %v105_v20 = vmax.f32 %v101_v17, 0.0 }
  0xd3   :  { %v106_v21 = vpack.c.bf16 %v105_v20, %v104_v19 }
  0xd5   :  { %320 = vmatmul.mubr.bf16.vlgmr.msra.gmra.mxu1 %v106_v21 }
 0x195   :  { %v212_v26 = vpop.f32.mrf.mxu1 }
 0x196   :  { %v213_v27 = vadd.f32 %v273_v25, %v212_v26 }
 0x197   :  { %v321_v28 = vpop.f32.mrf.mxu1 }
 0x198   :  { %v219_v30 = vmax.f32 %v213_v27, 0.0 }
 0x199   :  { %v215_v31 = vpop.f32.mrf.mxu1 }
 0x19a   :  { %v216_v32 = vadd.f32 %v273_v25, %v215_v31  ;;  %v228_v33 = vmul.f32 %v282_v29, %v219_v30 }
 0x19b   :  { %v322_v34 = vpop.f32.mrf.mxu1 }
 0x19c   :  { %v220_v35 = vmax.f32 %v216_v32, 0.0  ;;  %230 = vadd.xlane.f32.xlu0 %v228_v33 }
 0x19e   :  { %v229_v36 = vmul.f32 %v282_v29, %v220_v35 }
 0x1a0   :  { %232 = vadd.xlane.f32.xlu0 %v229_v36 }
 0x225   :  { %v231_v44 = vpop.xlane.xlu0 %230 }
 0x226   :  { %v244_v46 = vadd.f32 %v243_v42, %v231_v44 }
 0x228   :  { %v253_v50 = vrot.slane %v244_v46, %v252_v45 }
 0x229   :  { %v233_v48 = vpop.xlane.xlu0 %232 }
 0x22a   :  { %v245_v49 = vadd.f32 %v243_v42, %v233_v48 }
 0x22c   :  { %v258_v51 = vrot.slane %v245_v49, %v257_v47 }
 0x22e   :  { %v260_v52 = vsel %vm259_vm2, %v258_v51, %v253_v50 }
 0x22f   :  { %263 = vst.msk [vmem:[%s437_s7] sm:$0x1] %vm262_vm3, %v260_v52 }

</bundles_post_ra>
